<compile_context>
chip_gen: v6e
topology: v6e:2x2x1
jax: 0.10.0
libtpu: 0.0.40
codegen_flags: <defaults>
</compile_context>

<pallas_src>
import functools

import jax
import jax.numpy as jnp
from jax.experimental import pallas as pl
from jax.experimental.pallas import tpu as pltpu


def _round_up(a, m):
    return (a + m - 1) // m * m


def _gate_kernel(x_ref, h_ref, wx_ref, wh_ref, b_ref, o_ref):
    xv = x_ref[...]
    hv = h_ref[...]
    # Wh = [x, h] @ W_z + b  ==  x @ W_x + h @ W_h + b   (f32 accumulation on MXU)
    wh = (
        jnp.dot(xv, wx_ref[...], preferred_element_type=jnp.float32)
        + jnp.dot(hv, wh_ref[...], preferred_element_type=jnp.float32)
        + b_ref[...].astype(jnp.float32)
    )
    gate = jax.nn.sigmoid(wh)
    xf = xv.astype(jnp.float32)
    hf = hv.astype(jnp.float32)
    # z = gate * x + (1 - gate) * h  ==  h + gate * (x - h)
    o_ref[...] = (hf + gate * (xf - hf)).astype(o_ref.dtype)


def _choose_tile_m(m_rows, d_feat, act_itemsize):
    """Pick an M-tile that fills the pipeline without blowing VMEM."""
    # Resident weights (2 matrices, double-buffered by default) + bias, in f32.
    wgt_bytes = 2 * 2 * d_feat * d_feat * 4 + 2 * 8 * d_feat * 4
    act_budget = 24 * 1024 * 1024                       # conservative across gens
    per_row = 2 * 3 * d_feat * act_itemsize             # 2 bufs x (x, h, out)
    tm = max(8, (act_budget - wgt_bytes) // per_row)
    tm = min(tm, 1024)
    # Prefer >= 2 grid steps (v7x has 2 TensorCores) when there is enough work.
    half = _round_up(-(-m_rows // 2), 8)
    tm = min(tm, max(8, half))
    return int(max(8, (tm // 8) * 8))


@functools.partial(jax.jit, static_argnames=("tile_m",))
def gate_forward(x, h, w_z, b, *, tile_m=None):
    """z = sigmoid(cat(x, h) @ W_z + b) * x + (1 - sigmoid(...)) * h."""
    assert x.shape == h.shape
    n_out = x.shape[-1]
    assert w_z.shape == (2 * n_out, n_out)
    assert b.shape == (1, n_out)

    lead_shape = x.shape[:-1]
    M = 1
    for d in lead_shape:
        M *= d
    x2 = x.reshape(M, n_out)
    h2 = h.reshape(M, n_out)

    # Split W_z so the concat never has to happen inside the kernel.
    w_x = w_z[:n_out, :]
    w_h = w_z[n_out:, :]

    # ---- lane-density handling of the feature dim ---------------------------
    if n_out < 128 and 128 % n_out == 0:
        r = 128 // n_out          # pack r logical rows into one 128-lane row
    else:
        r = 1

    if r > 1:
        D = r * n_out
        eye = jnp.eye(r, dtype=w_z.dtype)
        w_x = jnp.kron(eye, w_x)                 # (D, D) block-diagonal
        w_h = jnp.kron(eye, w_h)
        b_eff = jnp.tile(b, (1, r))              # (1, D)
        pad_r = (-M) % r
        if pad_r:
            x2 = jnp.pad(x2, ((0, pad_r), (0, 0)))
            h2 = jnp.pad(h2, ((0, pad_r), (0, 0)))
        Mp = (M + pad_r) // r
        x2 = x2.reshape(Mp, D)
        h2 = h2.reshape(Mp, D)
    else:
        # Pad feature dim to a multiple of 128 so output stores are unmasked.
        D = _round_up(n_out, 128)
        pad_f = D - n_out
        if pad_f:
            x2 = jnp.pad(x2, ((0, 0), (0, pad_f)))
            h2 = jnp.pad(h2, ((0, 0), (0, pad_f)))
            w_x = jnp.pad(w_x, ((0, pad_f), (0, pad_f)))
            w_h = jnp.pad(w_h, ((0, pad_f), (0, pad_f)))
            b_eff = jnp.pad(b, ((0, 0), (0, pad_f)))
        else:
            b_eff = b
        Mp = M

    # ---- M tiling: pad to a multiple of the tile, never one giant block -----
    itemsize = jnp.dtype(x.dtype).itemsize
    if tile_m is None:
        tm = _choose_tile_m(Mp, D, itemsize)
    else:
        tm = max(8, (int(tile_m) // 8) * 8)
    pad_m = (-Mp) % tm
    if pad_m:
        x2 = jnp.pad(x2, ((0, pad_m), (0, 0)))
        h2 = jnp.pad(h2, ((0, pad_m), (0, 0)))
    Mg = Mp + pad_m
    grid = (Mg // tm,)

    # Explicit VMEM limit so big M-tiles compile; capped for v7x's 64 MiB.
    footprint = 2 * 3 * tm * D * itemsize + 2 * 2 * D * D * 4 + 2 * 8 * D * 4
    vmem_limit = int(min(max(32 * 1024 * 1024, 2 * footprint), 64 * 1024 * 1024))

    out = pl.pallas_call(
        _gate_kernel,
        out_shape=jax.ShapeDtypeStruct((Mg, D), x.dtype),
        grid_spec=pltpu.PrefetchScalarGridSpec(
            num_scalar_prefetch=0,
            grid=grid,
            in_specs=[
                pl.BlockSpec((tm, D), lambda i: (i, 0)),   # x tile (streamed)
                pl.BlockSpec((tm, D), lambda i: (i, 0)),   # h tile (streamed)
                pl.BlockSpec((D, D), lambda i: (0, 0)),    # W_x (resident)
                pl.BlockSpec((D, D), lambda i: (0, 0)),    # W_h (resident)
                pl.BlockSpec((1, D), lambda i: (0, 0)),    # bias (resident)
            ],
            out_specs=pl.BlockSpec((tm, D), lambda i: (i, 0)),
        ),
        compiler_params=pltpu.CompilerParams(
            dimension_semantics=("parallel",),
            vmem_limit_bytes=vmem_limit,
        ),
    )(x2, h2, w_x, w_h, b_eff)

    out = out[:Mp]                                   # drop M-tile padding
    if r > 1:
        out = out.reshape(Mp * r, n_out)[:M]         # unpack lanes, drop pack pad
    else:
        out = out[:, :n_out]                         # drop feature padding
    return out.reshape(*lead_shape, n_out)


def gate_reference(x, h, w_z, b):
    x_h = jnp.concatenate((x, h), axis=-1)
    wh = jnp.matmul(x_h, w_z)
    gate = jax.nn.sigmoid(wh + b)
    return gate * x + (1.0 - gate) * h


def xavier_uniform(key, shape, gain=1.414):
    # torch.nn.init.xavier_uniform_ for a 2-D tensor (fan_in=shape[1], fan_out=shape[0])
    fan_in, fan_out = shape[1], shape[0]
    bound = gain * (6.0 / (fan_in + fan_out)) ** 0.5
    return jax.random.uniform(key, shape, jnp.float32, minval=-bound, maxval=bound)


if __name__ == "__main__":
    n_out = 32
    batch, seq = 2, 8          # leading dims -> M = 16 rows

    key = jax.random.PRNGKey(0)
    k_x, k_h, k_w, k_b = jax.random.split(key, 4)

    x = jax.random.normal(k_x, (batch, seq, n_out), jnp.float32)
    h = jax.random.normal(k_h, (batch, seq, n_out), jnp.float32)
    W_z = xavier_uniform(k_w, (2 * n_out, n_out))
    b = xavier_uniform(k_b, (1, n_out))

    z = gate_forward(x, h, W_z, b)
    jax.block_until_ready(z)

    z_ref = gate_reference(x, h, W_z, b)
    assert z.shape == z_ref.shape, "shape mismatch vs reference"
    assert jnp.allclose(z, z_ref, atol=1e-5, rtol=1e-5), "mismatch vs reference"

    print("KERNEL_OK")
</pallas_src>

<mosaic_0001>
module attributes {stable_mosaic.version = 11 : i64} {
  func.func @_gate_kernel(%arg0: i32, %arg1: memref<8x128xf32, #tpu.memory_space<vmem>>, %arg2: memref<8x128xf32, #tpu.memory_space<vmem>>, %arg3: memref<128x128xf32, #tpu.memory_space<vmem>>, %arg4: memref<128x128xf32, #tpu.memory_space<vmem>>, %arg5: memref<1x128xf32, #tpu.memory_space<vmem>>, %arg6: memref<8x128xf32, #tpu.memory_space<vmem>>) attributes {dimension_semantics = [#tpu.dimension_semantics<parallel>], iteration_bounds = array<i64: 1>, scalar_prefetch = 0 : i64, scratch_operands = 0 : i64, tpu.core_type = #tpu.core_type<tc>, window_params = [{transform_indices = @transform_0, window_bounds = array<i64: 8, 128>}, {transform_indices = @transform_1, window_bounds = array<i64: 8, 128>}, {pipeline_mode = #tpu.pipeline_mode<synchronous>, transform_indices = @transform_2, window_bounds = array<i64: 128, 128>}, {pipeline_mode = #tpu.pipeline_mode<synchronous>, transform_indices = @transform_3, window_bounds = array<i64: 128, 128>}, {pipeline_mode = #tpu.pipeline_mode<synchronous>, transform_indices = @transform_4, window_bounds = array<i64: 1, 128>}, {transform_indices = @transform_5, window_bounds = array<i64: 8, 128>}]} {
    %c0 = arith.constant 0 : index
    %c0_0 = arith.constant 0 : index
    %0 = vector.load %arg1[%c0, %c0_0] : memref<8x128xf32, #tpu.memory_space<vmem>>, vector<8x128xf32>
    %c0_1 = arith.constant 0 : index
    %c0_2 = arith.constant 0 : index
    %1 = vector.load %arg2[%c0_1, %c0_2] : memref<8x128xf32, #tpu.memory_space<vmem>>, vector<8x128xf32>
    %c0_3 = arith.constant 0 : index
    %c0_4 = arith.constant 0 : index
    %2 = vector.load %arg3[%c0_3, %c0_4] : memref<128x128xf32, #tpu.memory_space<vmem>>, vector<128x128xf32>
    %cst = arith.constant dense<0.000000e+00> : vector<8x128xf32>
    %3 = tpu.matmul %0, %2, %cst {dimension_numbers = #tpu.dot_dimension_numbers<[1], [0], [0], [1], [0, 0, 1, 1], [], []>} : vector<8x128xf32>, vector<128x128xf32>, vector<8x128xf32> -> vector<8x128xf32>
    %c0_5 = arith.constant 0 : index
    %c0_6 = arith.constant 0 : index
    %4 = vector.load %arg4[%c0_5, %c0_6] : memref<128x128xf32, #tpu.memory_space<vmem>>, vector<128x128xf32>
    %cst_7 = arith.constant dense<0.000000e+00> : vector<8x128xf32>
    %5 = tpu.matmul %1, %4, %cst_7 {dimension_numbers = #tpu.dot_dimension_numbers<[1], [0], [0], [1], [0, 0, 1, 1], [], []>} : vector<8x128xf32>, vector<128x128xf32>, vector<8x128xf32> -> vector<8x128xf32>
    %6 = arith.addf %3, %5 : vector<8x128xf32>
    %c0_8 = arith.constant 0 : index
    %c0_9 = arith.constant 0 : index
    %7 = vector.load %arg5[%c0_8, %c0_9] : memref<1x128xf32, #tpu.memory_space<vmem>>, vector<1x128xf32>
    %8 = vector.broadcast %7 : vector<1x128xf32> to vector<8x128xf32>
    %9 = arith.addf %6, %8 : vector<8x128xf32>
    %10 = arith.negf %9 : vector<8x128xf32>
    %11 = math.exp %10 : vector<8x128xf32>
    %cst_10 = arith.constant 1.000000e+00 : f32
    %12 = vector.broadcast %cst_10 : f32 to vector<8x128xf32>
    %13 = arith.addf %12, %11 : vector<8x128xf32>
    %14 = arith.divf %12, %13 : vector<8x128xf32>
    %15 = arith.subf %0, %1 : vector<8x128xf32>
    %16 = arith.mulf %14, %15 : vector<8x128xf32>
    %17 = arith.addf %1, %16 : vector<8x128xf32>
    %c0_11 = arith.constant 0 : index
    %c0_12 = arith.constant 0 : index
    %18 = vector.load %arg6[%c0_11, %c0_12] : memref<8x128xf32, #tpu.memory_space<vmem>>, vector<8x128xf32>
    tpu.vector_store %arg6[%c0_11, %c0_12], %17 {strides = array<i32>} : memref<8x128xf32, #tpu.memory_space<vmem>>, vector<8x128xf32>,
    return
  }
  func.func @transform_0(%arg0: i32) -> (i32, i32) {
    %c0_i32 = arith.constant 0 : i32
    %c0_i32_0 = arith.constant 0 : i32
    return %arg0, %c0_i32 : i32, i32
  }
  func.func @transform_1(%arg0: i32) -> (i32, i32) {
    %c0_i32 = arith.constant 0 : i32
    %c0_i32_0 = arith.constant 0 : i32
    return %arg0, %c0_i32 : i32, i32
  }
  func.func @transform_2(%arg0: i32) -> (i32, i32) {
    %c0_i32 = arith.constant 0 : i32
    %c0_i32_0 = arith.constant 0 : i32
    %c0_i32_1 = arith.constant 0 : i32
    return %c0_i32, %c0_i32_0 : i32, i32
  }
  func.func @transform_3(%arg0: i32) -> (i32, i32) {
    %c0_i32 = arith.constant 0 : i32
    %c0_i32_0 = arith.constant 0 : i32
    %c0_i32_1 = arith.constant 0 : i32
    return %c0_i32, %c0_i32_0 : i32, i32
  }
  func.func @transform_4(%arg0: i32) -> (i32, i32) {
    %c0_i32 = arith.constant 0 : i32
    %c0_i32_0 = arith.constant 0 : i32
    %c0_i32_1 = arith.constant 0 : i32
    return %c0_i32, %c0_i32_0 : i32, i32
  }
  func.func @transform_5(%arg0: i32) -> (i32, i32) {
    %c0_i32 = arith.constant 0 : i32
    %c0_i32_0 = arith.constant 0 : i32
    return %arg0, %c0_i32 : i32, i32
  }
}

</mosaic_0001>

<bundles_post_ra>
// kernel: gate_forward.1
= control target key start
LH: loop header
LB: loop body
LE: loop exit
PB: predicated region body
PF: predicated region fallthrough
CT: control target
= control target key end

     0   :  { %v328_v0 = vmov 0.0   ;;  %vm329_vm0 = vmmov 0   ;;  %s502_s3 = inlined_call_operand.vmem [shape: f32[128,128], index: 3, kind: input, shape index: {}]   ;;  %s503_s2 = inlined_call_operand.vmem [shape: f32[128,128], index: 2, kind: input, shape index: {}]   ;;  %s504_s1 = inlined_call_operand.vmem [shape: f32[8,128], index: 1, kind: input, shape index: {}]   ;;  %s505_s0 = inlined_call_operand.vmem [shape: f32[8,128], index: 0, kind: input, shape index: {}]   ;;  %s506_s4 = inlined_call_operand.vmem [shape: f32[1,128], index: 4, kind: input, shape index: {}]   ;;  %s507_s5 = inlined_call_operand.vmem [shape: f32[8,128], index: 5, kind: output, shape index: {}]  }
   0x1   :  { %252 = vmatprep.subr.mxu0 %v328_v0  ;;  %287 = vmatprep.subr.mxu1 %v328_v0  ;;  %v53_v1 = vld [vmem:[%s502_s3 + $0x78] sm:$0xff]  ;;  %v52_v3 = vld [vmem:[%s502_s3 + $0x70] sm:$0xff]  ;;  %v51_v5 = vld [vmem:[%s502_s3 + $0x68] sm:$0xff] }
   0x2   :  { %v37_v2 = vld [vmem:[%s503_s2 + $0x78] sm:$0xff]  ;;  %253 = vmatpush3.msra.mxu0 %v53_v1  ;;  %v36_v4 = vld [vmem:[%s503_s2 + $0x70] sm:$0xff]  ;;  %v35_v6 = vld [vmem:[%s503_s2 + $0x68] sm:$0xff]  ;;  %284 = vmatprep.mubr.msk.f32.mxu0 %vm329_vm0, %v328_v0 }
   0x3   :  { %288 = vmatpush3.msra.mxu1 %v37_v2  ;;  %254 = vmatprep.subr.mxu0 %v328_v0  ;;  %v50_v7 = vld [vmem:[%s502_s3 + $0x60] sm:$0xff]  ;;  %v49_v9 = vld [vmem:[%s502_s3 + $0x58] sm:$0xff]  ;;  %v48_v11 = vld [vmem:[%s502_s3 + $0x50] sm:$0xff] }
   0x4   :  { %289 = vmatprep.subr.mxu1 %v328_v0  ;;  %255 = vmatpush3.msra.mxu0 %v52_v3  ;;  %v34_v8 = vld [vmem:[%s503_s2 + $0x60] sm:$0xff]  ;;  %v33_v10 = vld [vmem:[%s503_s2 + $0x58] sm:$0xff]  ;;  %v32_v12 = vld [vmem:[%s503_s2 + $0x50] sm:$0xff] }
   0x5   :  { %290 = vmatpush3.msra.mxu1 %v36_v4  ;;  %256 = vmatprep.subr.mxu0 %v328_v0  ;;  %v47_v13 = vld [vmem:[%s502_s3 + $0x48] sm:$0xff]  ;;  %v46_v15 = vld [vmem:[%s502_s3 + $0x40] sm:$0xff]  ;;  %v45_v17 = vld [vmem:[%s502_s3 + $0x38] sm:$0xff] }
   0x6   :  { %291 = vmatprep.subr.mxu1 %v328_v0  ;;  %257 = vmatpush3.msra.mxu0 %v51_v5  ;;  %v31_v14 = vld [vmem:[%s503_s2 + $0x48] sm:$0xff]  ;;  %v30_v16 = vld [vmem:[%s503_s2 + $0x40] sm:$0xff]  ;;  %v29_v18 = vld [vmem:[%s503_s2 + $0x38] sm:$0xff] }
   0x7   :  { %292 = vmatpush3.msra.mxu1 %v35_v6  ;;  %258 = vmatprep.subr.mxu0 %v328_v0  ;;  %v44_v19 = vld [vmem:[%s502_s3 + $0x30] sm:$0xff]  ;;  %v43_v21 = vld [vmem:[%s502_s3 + $0x28] sm:$0xff]  ;;  %v42_v23 = vld [vmem:[%s502_s3 + $0x20] sm:$0xff] }
   0x8   :  { %293 = vmatprep.subr.mxu1 %v328_v0  ;;  %259 = vmatpush3.msra.mxu0 %v50_v7  ;;  %v28_v20 = vld [vmem:[%s503_s2 + $0x30] sm:$0xff]  ;;  %v27_v22 = vld [vmem:[%s503_s2 + $0x28] sm:$0xff]  ;;  %v26_v24 = vld [vmem:[%s503_s2 + $0x20] sm:$0xff] }
   0x9   :  { %294 = vmatpush3.msra.mxu1 %v34_v8  ;;  %260 = vmatprep.subr.mxu0 %v328_v0  ;;  %v41_v25 = vld [vmem:[%s502_s3 + $0x18] sm:$0xff]  ;;  %v40_v27 = vld [vmem:[%s502_s3 + $0x10] sm:$0xff]  ;;  %v39_v29 = vld [vmem:[%s502_s3 + $0x8] sm:$0xff] }
   0xa   :  { %295 = vmatprep.subr.mxu1 %v328_v0  ;;  %261 = vmatpush3.msra.mxu0 %v49_v9  ;;  %v25_v26 = vld [vmem:[%s503_s2 + $0x18] sm:$0xff]  ;;  %v24_v28 = vld [vmem:[%s503_s2 + $0x10] sm:$0xff]  ;;  %v23_v30 = vld [vmem:[%s503_s2 + $0x8] sm:$0xff] }
   0xb   :  { %296 = vmatpush3.msra.mxu1 %v33_v10  ;;  %262 = vmatprep.subr.mxu0 %v328_v0  ;;  %v38_v31 = vld [vmem:[%s502_s3] sm:$0xff] }
   0xc   :  { %297 = vmatprep.subr.mxu1 %v328_v0  ;;  %263 = vmatpush3.msra.mxu0 %v48_v11  ;;  %v22_v32 = vld [vmem:[%s503_s2] sm:$0xff] }
   0xd   :  { %298 = vmatpush3.msra.mxu1 %v32_v12  ;;  %264 = vmatprep.subr.mxu0 %v328_v0  ;;  %v21_v33 = vld [vmem:[%s504_s1] sm:$0xff] }
   0xe   :  { %299 = vmatprep.subr.mxu1 %v328_v0  ;;  %265 = vmatpush3.msra.mxu0 %v47_v13  ;;  %v20_v34 = vld [vmem:[%s505_s0] sm:$0xff] }
   0xf   :  { %300 = vmatpush3.msra.mxu1 %v31_v14  ;;  %266 = vmatprep.subr.mxu0 %v328_v0  ;;  %v216_v37 = vld [vmem:[%s506_s4] ss:$0 sm:$0xff]  ;;  %v208_v45 = vsub.f32 %v20_v34, %v21_v33 }
  0x10   :  { %301 = vmatprep.subr.mxu1 %v328_v0  ;;  %267 = vmatpush3.msra.mxu0 %v46_v15 }
  0x11   :  { %302 = vmatpush3.msra.mxu1 %v30_v16  ;;  %268 = vmatprep.subr.mxu0 %v328_v0 }
  0x12   :  { %303 = vmatprep.subr.mxu1 %v328_v0  ;;  %269 = vmatpush3.msra.mxu0 %v45_v17 }
  0x13   :  { %304 = vmatpush3.msra.mxu1 %v29_v18  ;;  %270 = vmatprep.subr.mxu0 %v328_v0 }
  0x14   :  { %305 = vmatprep.subr.mxu1 %v328_v0  ;;  %271 = vmatpush3.msra.mxu0 %v44_v19 }
  0x15   :  { %306 = vmatpush3.msra.mxu1 %v28_v20  ;;  %272 = vmatprep.subr.mxu0 %v328_v0 }
  0x16   :  { %307 = vmatprep.subr.mxu1 %v328_v0  ;;  %273 = vmatpush3.msra.mxu0 %v43_v21 }
  0x17   :  { %308 = vmatpush3.msra.mxu1 %v27_v22  ;;  %274 = vmatprep.subr.mxu0 %v328_v0 }
  0x18   :  { %309 = vmatprep.subr.mxu1 %v328_v0  ;;  %275 = vmatpush3.msra.mxu0 %v42_v23 }
  0x19   :  { %310 = vmatpush3.msra.mxu1 %v26_v24  ;;  %276 = vmatprep.subr.mxu0 %v328_v0 }
  0x1a   :  { %311 = vmatprep.subr.mxu1 %v328_v0  ;;  %277 = vmatpush3.msra.mxu0 %v41_v25 }
  0x1b   :  { %312 = vmatpush3.msra.mxu1 %v25_v26  ;;  %278 = vmatprep.subr.mxu0 %v328_v0 }
  0x1c   :  { %313 = vmatprep.subr.mxu1 %v328_v0  ;;  %279 = vmatpush3.msra.mxu0 %v40_v27 }
  0x1d   :  { %314 = vmatpush3.msra.mxu1 %v24_v28  ;;  %280 = vmatprep.subr.mxu0 %v328_v0 }
  0x1e   :  { %315 = vmatprep.subr.mxu1 %v328_v0  ;;  %281 = vmatpush3.msra.mxu0 %v39_v29 }
  0x1f   :  { %316 = vmatpush3.msra.mxu1 %v23_v30  ;;  %282 = vmatprep.subr.mxu0 %v328_v0 }
  0x20   :  { %317 = vmatprep.subr.mxu1 %v328_v0  ;;  %283 = vmatpush3.msra.mxu0 %v38_v31 }
  0x21   :  { %318 = vmatpush3.msra.mxu1 %v22_v32  ;;  %319 = vmatprep.mubr.msk.f32.mxu1 %vm329_vm0, %v328_v0 }
  0x22   :  { %285 = vmatmul.mubr.f32.vlgmr.msra.gmra.mxu0 %v21_v33  ;;  %320 = vmatmul.mubr.f32.vlgmr.msra.gmra.mxu1 %v20_v34 }
  0xe2   :  { %v120_v35 = vpop.f32.mrf.mxu0  ;;  %v190_v36 = vpop.f32.mrf.mxu1 }
  0xe3   :  { %v191_v38 = vadd.f32 %v190_v36, %v120_v35 }
  0xe4   :  { %v286_v39 = vpop.f32.mrf.mxu0  ;;  %v321_v40 = vpop.f32.mrf.mxu1 }
  0xe5   :  { %v201_v41 = vadd.f32 %v216_v37, %v191_v38 }
  0xe7   :  { %v217_v42 = vmul.f32 -1.442695, %v201_v41 }
  0xe9   :  { %324 = vpow2.f32 %v217_v42 }
  0xf6   :  { %v325_v43 = vpop.eup %324 }
  0xf7   :  { %v205_v44 = vadd.f32 1.0, %v325_v43 }
  0xf9   :  { %326 = vrcp.f32 %v205_v44 }
 0x106   :  { %v327_v46 = vpop.eup %326 }
 0x107   :  { %v209_v47 = vmul.f32 %v327_v46, %v208_v45 }
 0x109   :  { %v210_v48 = vadd.f32 %v209_v47, %v21_v33 }
 0x10b   :  { %211 = vst [vmem:[%s507_s5] sm:$0xff] %v210_v48 }

</bundles_post_ra>
